<compile_context>
chip_gen: v5e
topology: v5e:2x2
jax: 0.10.0
libtpu: 0.0.40
codegen_flags: <defaults>
</compile_context>

<pallas_src>
import functools

import jax
import jax.numpy as jnp
from jax.experimental import pallas as pl
from jax.experimental.pallas import tpu as pltpu


def _round_up(x, m):
    return (x + m - 1) // m * m


def _pick_col_tile(B, Dp, col_tile, sublane, itemsize):
    """Column-tile size: lane-dense (multiple of 128) once B >= 128, shrunk so
    the resident audio + live (Bp, tn) f32 temporaries + text tiles stay inside
    a ~40 MiB VMEM budget (v7x: 64 MiB physical / 32 MiB default scoped)."""
    if B < 128:
        return min(_round_up(B, sublane), max(_round_up(col_tile, sublane), sublane))
    tn = min(_round_up(B, 128), max(_round_up(col_tile, 128), 128))
    budget = 40 << 20
    while tn > 128:
        Bp = _round_up(B, tn)
        need = Bp * Dp * itemsize + 4 * Bp * tn * 4 + 2 * tn * Dp * itemsize
        if need <= budget:
            break
        tn = max(128, _round_up(tn // 2, 128))
    return tn


# ---------------------------------------------------------------------------
# Pallas kernel: CLIPLoss1D forward (column-tiled, online logsumexp for rows)
# ---------------------------------------------------------------------------
def clip_loss_kernel(a_hbm_ref, t_ref, loss_ref,
                     a_ref, m_row_ref, l_row_ref, rbias_ref, acc_ref, dma_sem,
                     *, nvalid):
    """
    a_hbm_ref : (Bp, Dp) pre-normalized, logit-scale-folded audio (HBM; DMA'd once)
    t_ref     : (tn, Dp) pre-normalized text column tile (auto-pipelined)
    loss_ref  : (1,) scalar loss (SMEM output)
    a_ref     : (Bp, Dp) single resident VMEM copy of the audio
    m/l_row   : (Bp, 1) online-logsumexp row state
    rbias_ref : (Bp, 1) additive row-validity bias (0 / -inf), used only if padded
    acc_ref   : (2,) SMEM accumulators [sum_lse_col, sum_diag]
    """
    j = pl.program_id(0)
    ntiles = pl.num_programs(0)
    Bp = a_ref.shape[0]
    tn = t_ref.shape[0]
    padded = Bp != nvalid                      # trace-time constant
    neg_inf = jnp.float32(-jnp.inf)

    # ---- one-time init: single DMA of the bf16 audio + zeroed accumulators
    @pl.when(j == 0)
    def _init():
        cp = pltpu.make_async_copy(a_hbm_ref, a_ref, dma_sem)
        cp.start()
        m_row_ref[...] = jnp.full_like(m_row_ref, -jnp.inf)
        l_row_ref[...] = jnp.zeros_like(l_row_ref)
        if padded:
            rvalid = jax.lax.broadcasted_iota(jnp.int32, m_row_ref.shape, 0) < nvalid
            rbias_ref[...] = jnp.where(rvalid, jnp.float32(0.0), neg_inf)
        acc_ref[0] = 0.0        # sum over text cols of logsumexp over audio axis
        acc_ref[1] = 0.0        # sum of diagonal logits (shared by both CE terms)
        cp.wait()

    # (Bp, tn) logits tile: bf16 operands (scale pre-folded into the audio),
    # f32 MXU accumulation.  NT contraction on the last dims (canonical
    # flash-attention form; if the Mosaic dump shows a per-tile vxpose, switch
    # the wrapper to a (Dp, B) text layout instead).
    lg = jax.lax.dot_general(
        a_ref[...], t_ref[...],
        dimension_numbers=(((1,), (1,)), ((), ())),
        preferred_element_type=jnp.float32)

    # ---- audio-direction CE: online logsumexp across column tiles
    if padded:
        col_valid = (j * tn + jax.lax.broadcasted_iota(jnp.int32, (1, tn), 1)) < nvalid
        lg_r = lg + jnp.where(col_valid, jnp.float32(0.0), neg_inf)   # one VPU pass
    else:
        lg_r = lg
    m_prev = m_row_ref[...]
    m_new = jnp.maximum(m_prev, jnp.max(lg_r, axis=-1, keepdims=True))
    l_row_ref[...] = (jnp.exp(m_prev - m_new) * l_row_ref[...]
                      + jnp.sum(jnp.exp(lg_r - m_new), axis=-1, keepdims=True))
    m_row_ref[...] = m_new

    # ---- text-direction CE: full column resident -> direct axis-0 logsumexp
    if padded:
        lg_c = lg + rbias_ref[...]                                    # one VPU pass
    else:
        lg_c = lg
    m_col = jnp.max(lg_c, axis=0, keepdims=True)
    lse_col = m_col + jnp.log(jnp.sum(jnp.exp(lg_c - m_col), axis=0, keepdims=True))
    if padded:
        acc_ref[0] += jnp.sum(jnp.where(col_valid, lse_col, 0.0))
    else:
        acc_ref[0] += jnp.sum(lse_col)

    # ---- diagonal (label) term, shared by both CE directions.
    # Row-slice dot (tn x Dp) instead of a full (Bp, tn) mask; padded rows/cols
    # are exactly zero so they contribute nothing.
    start = pl.multiple_of(j * tn, tn)
    a_diag = a_ref[pl.ds(start, tn), :].astype(jnp.float32)
    acc_ref[1] += jnp.sum(a_diag * t_ref[...].astype(jnp.float32))

    # ---- finalize
    @pl.when(j == ntiles - 1)
    def _fin():
        lse_row = m_row_ref[...] + jnp.log(l_row_ref[...])
        if padded:
            rvalid = jax.lax.broadcasted_iota(jnp.int32, m_row_ref.shape, 0) < nvalid
            sum_lse_row = jnp.sum(jnp.where(rvalid, lse_row, 0.0))
        else:
            sum_lse_row = jnp.sum(lse_row)
        loss_ref[0] = (0.5 / nvalid) * (sum_lse_row + acc_ref[0] - 2.0 * acc_ref[1])


def clip_loss_1d(audio_features, text_features, log_logit_scale, *,
                 col_tile=512, use_bf16=True):
    """CLIPLoss1D.forward via a single Pallas call.  Returns a scalar loss.

    use_bf16=False keeps f32 MXU operands (accuracy fallback, slower matmul).
    """
    B, D = audio_features.shape
    assert text_features.shape == (B, D)

    a = audio_features.astype(jnp.float32)
    t = text_features.astype(jnp.float32)
    scale = jnp.exp(jnp.asarray(log_logit_scale, jnp.float32).reshape(()))

    # Normalization + logit-scale fold done wrapper-side (fuses into one XLA
    # elementwise pass): removes the f32 audio residency and the serialized
    # whole-batch normalization that previously sat inside the j==0 grid step.
    # NOTE: like PyTorch `x / x.norm()`, no eps -- an all-zero row yields NaN.
    a_n = a * (scale * jax.lax.rsqrt(jnp.sum(a * a, axis=-1, keepdims=True)))
    t_n = t * jax.lax.rsqrt(jnp.sum(t * t, axis=-1, keepdims=True))

    mxu_dtype = jnp.bfloat16 if use_bf16 else jnp.float32
    itemsize = 2 if use_bf16 else 4
    sublane = 16 if use_bf16 else 8             # packed-dtype sublane granularity

    Dp = _round_up(max(D, 128), 128)            # lane-dense feature dim
    tn = _pick_col_tile(B, Dp, col_tile, sublane, itemsize)
    Bp = _round_up(B, tn)
    ntiles = Bp // tn

    a_p = jnp.pad(a_n, ((0, Bp - B), (0, Dp - D))).astype(mxu_dtype)
    t_p = jnp.pad(t_n, ((0, Bp - B), (0, Dp - D))).astype(mxu_dtype)

    # Explicit scoped-VMEM budget: resident audio (single copy) + double-buffered
    # text tile + live (Bp, tn) f32 temporaries + (Bp, 1) row state, ~25% headroom.
    vmem_bytes = (Bp * Dp * itemsize            # resident audio (manual DMA, 1 copy)
                  + 2 * tn * Dp * itemsize      # double-buffered text column tile
                  + 4 * Bp * tn * 4             # live f32 logits temporaries
                  + 3 * Bp * 128 * 4            # m / l / row-bias (lane-padded)
                  + (2 << 20))                  # slack for small temporaries
    vmem_limit = max(32 << 20, min(int(vmem_bytes * 1.25), 128 << 20))

    grid_spec = pltpu.PrefetchScalarGridSpec(
        num_scalar_prefetch=0,
        grid=(ntiles,),
        in_specs=[
            pl.BlockSpec(memory_space=pl.ANY),            # audio: HBM, DMA'd once
            pl.BlockSpec((tn, Dp), lambda j: (j, 0)),     # text: column tile
        ],
        out_specs=pl.BlockSpec(memory_space=pltpu.SMEM),  # scalar loss
        scratch_shapes=[
            pltpu.VMEM((Bp, Dp), mxu_dtype),   # resident normalized+scaled audio
            pltpu.VMEM((Bp, 1), jnp.float32),  # running row max (m)
            pltpu.VMEM((Bp, 1), jnp.float32),  # running row sum-exp (l)
            pltpu.VMEM((Bp, 1), jnp.float32),  # additive row-validity bias
            pltpu.SMEM((2,), jnp.float32),     # [sum_lse_col, sum_diag]
            pltpu.SemaphoreType.DMA,           # audio DMA completion
        ],
    )

    out = pl.pallas_call(
        functools.partial(clip_loss_kernel, nvalid=B),
        out_shape=jax.ShapeDtypeStruct((1,), jnp.float32),
        grid_spec=grid_spec,
        compiler_params=pltpu.CompilerParams(
            dimension_semantics=("arbitrary",),   # resident state across tiles
            vmem_limit_bytes=vmem_limit),
    )(a_p, t_p)
    return out[0]


# ---------------------------------------------------------------------------
# Stand-in encoders (plain-JAX glue; the real encoders are external modules)
# ---------------------------------------------------------------------------
def speech_encoder(params, audios, audios_mask):
    # audios: (B, T, F) f32, audios_mask: (B, T) {0,1}
    m = audios_mask[..., None].astype(jnp.float32)
    pooled = jnp.sum(audios * m, axis=1) / jnp.maximum(jnp.sum(m, axis=1), 1.0)
    flat = pooled @ params["w_speech"] + params["b_speech"]
    return {"flat_feat": flat}


def text_encoder(params, text_ids, text_ids_mask):
    # text_ids: (B, T) int32, text_ids_mask: (B, T) {0,1}
    emb = params["embed"][text_ids]                      # (B, T, De)
    m = text_ids_mask[..., None].astype(jnp.float32)
    pooled = jnp.sum(emb * m, axis=1) / jnp.maximum(jnp.sum(m, axis=1), 1.0)
    return pooled @ params["w_text"] + params["b_text"]


def contrastive_semantic_alignment_forward(params, audios, audios_mask,
                                           text_ids, text_ids_mask):
    x = speech_encoder(params, audios, audios_mask)
    y = text_encoder(params, text_ids, text_ids_mask)
    x = x["flat_feat"]
    return clip_loss_1d(x, y, params["log_logit_scale"])


# Pure-JAX reference of CLIPLoss1D for a correctness check.
def clip_loss_ref(a, t, log_scale):
    a = a / jnp.linalg.norm(a, axis=-1, keepdims=True)
    t = t / jnp.linalg.norm(t, axis=-1, keepdims=True)
    scale = jnp.exp(log_scale[0])
    logits = scale * a @ t.T
    labels = jnp.arange(a.shape[0])

    def ce(lg):
        lse = jax.scipy.special.logsumexp(lg, axis=-1)
        return jnp.mean(lse - lg[jnp.arange(lg.shape[0]), labels])

    return 0.5 * (ce(logits) + ce(logits.T))


if __name__ == "__main__":
    key = jax.random.PRNGKey(0)
    B, T_A, F_A = 16, 16, 20    # audio: batch, frames, features
    T_T, V, D_E = 12, 50, 24    # text: seq len, vocab, embed dim
    D = 32                      # shared projection dim

    ks = jax.random.split(key, 8)
    params = {
        "w_speech": jax.random.normal(ks[0], (F_A, D), jnp.float32) * 0.1,
        "b_speech": jnp.zeros((D,), jnp.float32),
        "embed":    jax.random.normal(ks[1], (V, D_E), jnp.float32) * 0.1,
        "w_text":   jax.random.normal(ks[2], (D_E, D), jnp.float32) * 0.1,
        "b_text":   jnp.zeros((D,), jnp.float32),
        # nn.Parameter(torch.ones([]) * np.log(1/0.07))
        "log_logit_scale": jnp.full((1,), jnp.log(1.0 / 0.07), jnp.float32),
    }

    audios = jax.random.normal(ks[3], (B, T_A, F_A), jnp.float32)
    audios_mask = (jax.random.uniform(ks[4], (B, T_A)) > 0.2).astype(jnp.float32)
    text_ids = jax.random.randint(ks[5], (B, T_T), 0, V, jnp.int32)
    text_ids_mask = (jax.random.uniform(ks[6], (B, T_T)) > 0.2).astype(jnp.float32)

    # Full-module forward (B is a multiple of the tile -> unpadded fast path).
    loss = contrastive_semantic_alignment_forward(
        params, audios, audios_mask, text_ids, text_ids_mask)
    loss = jax.block_until_ready(loss)

    a_feat = speech_encoder(params, audios, audios_mask)["flat_feat"]
    t_feat = text_encoder(params, text_ids, text_ids_mask)
    ref = clip_loss_ref(a_feat, t_feat, params["log_logit_scale"])
    assert jnp.allclose(loss, ref, rtol=2e-2, atol=2e-2), (loss, ref)

    # Non-aligned B and D: exercises padding masks and the multi-tile
    # (ntiles > 1) online-softmax path.
    B2, D2 = 20, 40
    k2a, k2b = jax.random.split(ks[7])
    a2 = jax.random.normal(k2a, (B2, D2), jnp.float32)
    t2 = jax.random.normal(k2b, (B2, D2), jnp.float32)
    loss2 = clip_loss_1d(a2, t2, params["log_logit_scale"], col_tile=16)
    loss2 = jax.block_until_ready(loss2)
    ref2 = clip_loss_ref(a2, t2, params["log_logit_scale"])
    assert jnp.allclose(loss2, ref2, rtol=2e-2, atol=2e-2), (loss2, ref2)

    # f32-MXU fallback flag (accuracy concern raised in the perf review).
    loss3 = clip_loss_1d(a2, t2, params["log_logit_scale"], col_tile=16,
                         use_bf16=False)
    loss3 = jax.block_until_ready(loss3)
    assert jnp.allclose(loss3, ref2, rtol=1e-3, atol=1e-3), (loss3, ref2)

    print("KERNEL_OK")
</pallas_src>

<mosaic_0001>
module attributes {stable_mosaic.version = 11 : i64} {
  func.func @clip_loss_kernel(%arg0: i32, %arg1: memref<16x128xbf16, #tpu.memory_space<any>>, %arg2: memref<16x128xbf16, #tpu.memory_space<vmem>>, %arg3: memref<1xf32, #tpu.memory_space<smem>>, %arg4: memref<16x128xbf16, #tpu.memory_space<vmem>>, %arg5: memref<16x1xf32, #tpu.memory_space<vmem>>, %arg6: memref<16x1xf32, #tpu.memory_space<vmem>>, %arg7: memref<16x1xf32, #tpu.memory_space<vmem>>, %arg8: memref<2xf32, #tpu.memory_space<smem>>, %arg9: memref<!tpu.dma_semaphore, #tpu.memory_space<semaphore_mem>>) attributes {dimension_semantics = [#tpu.dimension_semantics<arbitrary>], iteration_bounds = array<i64: 1>, scalar_prefetch = 0 : i64, scratch_operands = 6 : i64, tpu.core_type = #tpu.core_type<tc>, window_params = [{}, {transform_indices = @transform_1, window_bounds = array<i64: 16, 128>}, {transform_indices = @transform_2, window_bounds = array<i64: 1>}]} {
    %c0_i32 = arith.constant 0 : i32
    %0 = arith.cmpi eq, %arg0, %c0_i32 : i32
    %1 = arith.extui %0 : i1 to i32
    %c0_i32_0 = arith.constant 0 : i32
    %2 = arith.cmpi ne, %1, %c0_i32_0 : i32
    scf.if %2 {
      tpu.enqueue_dma source(%arg1 : memref<16x128xbf16, #tpu.memory_space<any>>) target(%arg4 : memref<16x128xbf16, #tpu.memory_space<vmem>>) target_semaphore(%arg9 : memref<!tpu.dma_semaphore, #tpu.memory_space<semaphore_mem>>)
      %cst_26 = arith.constant 0xFF800000 : f32
      %56 = vector.broadcast %cst_26 : f32 to vector<16x1xf32>
      %c0_27 = arith.constant 0 : index
      %c0_28 = arith.constant 0 : index
      %57 = vector.load %arg5[%c0_27, %c0_28] : memref<16x1xf32, #tpu.memory_space<vmem>>, vector<16x1xf32>
      tpu.vector_store %arg5[%c0_27, %c0_28], %56 {strides = array<i32>} : memref<16x1xf32, #tpu.memory_space<vmem>>, vector<16x1xf32>,
      %cst_29 = arith.constant 0.000000e+00 : f32
      %58 = vector.broadcast %cst_29 : f32 to vector<16x1xf32>
      %c0_30 = arith.constant 0 : index
      %c0_31 = arith.constant 0 : index
      %59 = vector.load %arg6[%c0_30, %c0_31] : memref<16x1xf32, #tpu.memory_space<vmem>>, vector<16x1xf32>
      tpu.vector_store %arg6[%c0_30, %c0_31], %58 {strides = array<i32>} : memref<16x1xf32, #tpu.memory_space<vmem>>, vector<16x1xf32>,
      %cst_32 = arith.constant 0.000000e+00 : f32
      %c0_33 = arith.constant 0 : index
      %60 = memref.load %arg8[%c0_33] : memref<2xf32, #tpu.memory_space<smem>>
      memref.store %cst_32, %arg8[%c0_33] : memref<2xf32, #tpu.memory_space<smem>>
      %cst_34 = arith.constant 0.000000e+00 : f32
      %c1_35 = arith.constant 1 : index
      %61 = memref.load %arg8[%c1_35] : memref<2xf32, #tpu.memory_space<smem>>
      memref.store %cst_34, %arg8[%c1_35] : memref<2xf32, #tpu.memory_space<smem>>
      tpu.wait_dma2 semaphore(%arg9 : memref<!tpu.dma_semaphore, #tpu.memory_space<semaphore_mem>>) src(%arg1 : memref<16x128xbf16, #tpu.memory_space<any>>) dst(%arg4 : memref<16x128xbf16, #tpu.memory_space<vmem>>)
    } else {
    }
    %c0 = arith.constant 0 : index
    %c0_1 = arith.constant 0 : index
    %3 = vector.load %arg4[%c0, %c0_1] : memref<16x128xbf16, #tpu.memory_space<vmem>>, vector<16x128xbf16>
    %c0_2 = arith.constant 0 : index
    %c0_3 = arith.constant 0 : index
    %4 = vector.load %arg2[%c0_2, %c0_3] : memref<16x128xbf16, #tpu.memory_space<vmem>>, vector<16x128xbf16>
    %cst = arith.constant dense<0.000000e+00> : vector<16x16xf32>
    %5 = tpu.matmul %3, %4, %cst {dimension_numbers = #tpu.dot_dimension_numbers<[1], [1], [0], [0], [0, 0, 1, 0], [], []>} : vector<16x128xbf16>, vector<16x128xbf16>, vector<16x16xf32> -> vector<16x16xf32>
    %c0_4 = arith.constant 0 : index
    %c0_5 = arith.constant 0 : index
    %6 = vector.load %arg5[%c0_4, %c0_5] : memref<16x1xf32, #tpu.memory_space<vmem>>, vector<16x1xf32>
    %cst_6 = arith.constant dense<0xFF800000> : vector<16xf32>
    %7 = vector.multi_reduction <maximumf>, %5, %cst_6 [1] : vector<16x16xf32> to vector<16xf32>
    %8 = vector.shape_cast %7 : vector<16xf32> to vector<16x1xf32>
    %9 = arith.maximumf %6, %8 : vector<16x1xf32>
    %10 = arith.subf %6, %9 : vector<16x1xf32>
    %11 = math.exp %10 : vector<16x1xf32>
    %c0_7 = arith.constant 0 : index
    %c0_8 = arith.constant 0 : index
    %12 = vector.load %arg6[%c0_7, %c0_8] : memref<16x1xf32, #tpu.memory_space<vmem>>, vector<16x1xf32>
    %13 = arith.mulf %11, %12 : vector<16x1xf32>
    %14 = vector.broadcast %9 : vector<16x1xf32> to vector<16x16xf32>
    %15 = arith.subf %5, %14 : vector<16x16xf32>
    %16 = math.exp %15 : vector<16x16xf32>
    %cst_9 = arith.constant dense<0.000000e+00> : vector<16xf32>
    %17 = vector.multi_reduction <add>, %16, %cst_9 [1] : vector<16x16xf32> to vector<16xf32>
    %18 = vector.shape_cast %17 : vector<16xf32> to vector<16x1xf32>
    %19 = arith.addf %13, %18 : vector<16x1xf32>
    %c0_10 = arith.constant 0 : index
    %c0_11 = arith.constant 0 : index
    %20 = vector.load %arg6[%c0_10, %c0_11] : memref<16x1xf32, #tpu.memory_space<vmem>>, vector<16x1xf32>
    tpu.vector_store %arg6[%c0_10, %c0_11], %19 {strides = array<i32>} : memref<16x1xf32, #tpu.memory_space<vmem>>, vector<16x1xf32>,
    %c0_12 = arith.constant 0 : index
    %c0_13 = arith.constant 0 : index
    %21 = vector.load %arg5[%c0_12, %c0_13] : memref<16x1xf32, #tpu.memory_space<vmem>>, vector<16x1xf32>
    tpu.vector_store %arg5[%c0_12, %c0_13], %9 {strides = array<i32>} : memref<16x1xf32, #tpu.memory_space<vmem>>, vector<16x1xf32>,
    %cst_14 = arith.constant dense<0xFF800000> : vector<16xf32>
    %22 = vector.multi_reduction <maximumf>, %5, %cst_14 [0] : vector<16x16xf32> to vector<16xf32>
    %23 = vector.shape_cast %22 : vector<16xf32> to vector<1x16xf32>
    %24 = vector.broadcast %23 : vector<1x16xf32> to vector<16x16xf32>
    %25 = arith.subf %5, %24 : vector<16x16xf32>
    %26 = math.exp %25 : vector<16x16xf32>
    %cst_15 = arith.constant dense<0.000000e+00> : vector<16xf32>
    %27 = vector.multi_reduction <add>, %26, %cst_15 [0] : vector<16x16xf32> to vector<16xf32>
    %28 = vector.shape_cast %27 : vector<16xf32> to vector<1x16xf32>
    %29 = math.log %28 : vector<1x16xf32>
    %30 = arith.addf %23, %29 : vector<1x16xf32>
    %c0_16 = arith.constant 0 : index
    %31 = memref.load %arg8[%c0_16] : memref<2xf32, #tpu.memory_space<smem>>
    %32 = vector.shape_cast %30 : vector<1x16xf32> to vector<1x1x16xf32>
    %cst_17 = arith.constant dense<0.000000e+00> : vector<1xf32>
    %33 = vector.multi_reduction <add>, %32, %cst_17 [1, 2] : vector<1x1x16xf32> to vector<1xf32>
    %34 = vector.shape_cast %33 : vector<1xf32> to vector<1x1x1xf32>
    %35 = vector.extract %34[0, 0, 0] : f32 from vector<1x1x1xf32>
    %36 = arith.addf %31, %35 : f32
    %c0_18 = arith.constant 0 : index
    %37 = memref.load %arg8[%c0_18] : memref<2xf32, #tpu.memory_space<smem>>
    memref.store %36, %arg8[%c0_18] : memref<2xf32, #tpu.memory_space<smem>>
    %c16_i32 = arith.constant 16 : i32
    %38 = arith.muli %arg0, %c16_i32 : i32
    %39 = tpu.assume_multiple %38, 16 : i32
    %40 = arith.index_cast %39 : i32 to index
    %c0_19 = arith.constant 0 : index
    %41 = vector.load %arg4[%40, %c0_19] : memref<16x128xbf16, #tpu.memory_space<vmem>>, vector<16x128xbf16>
    %42 = arith.extf %41 : vector<16x128xbf16> to vector<16x128xf32>
    %c1 = arith.constant 1 : index
    %43 = memref.load %arg8[%c1] : memref<2xf32, #tpu.memory_space<smem>>
    %c0_20 = arith.constant 0 : index
    %c0_21 = arith.constant 0 : index
    %44 = vector.load %arg2[%c0_20, %c0_21] : memref<16x128xbf16, #tpu.memory_space<vmem>>, vector<16x128xbf16>
    %45 = arith.extf %44 : vector<16x128xbf16> to vector<16x128xf32>
    %46 = arith.mulf %42, %45 : vector<16x128xf32>
    %47 = vector.shape_cast %46 : vector<16x128xf32> to vector<1x16x128xf32>
    %cst_22 = arith.constant dense<0.000000e+00> : vector<1xf32>
    %48 = vector.multi_reduction <add>, %47, %cst_22 [1, 2] : vector<1x16x128xf32> to vector<1xf32>
    %49 = vector.shape_cast %48 : vector<1xf32> to vector<1x1x1xf32>
    %50 = vector.extract %49[0, 0, 0] : f32 from vector<1x1x1xf32>
    %51 = arith.addf %43, %50 : f32
    %c1_23 = arith.constant 1 : index
    %52 = memref.load %arg8[%c1_23] : memref<2xf32, #tpu.memory_space<smem>>
    memref.store %51, %arg8[%c1_23] : memref<2xf32, #tpu.memory_space<smem>>
    %c0_i32_24 = arith.constant 0 : i32
    %53 = arith.cmpi eq, %arg0, %c0_i32_24 : i32
    %54 = arith.extui %53 : i1 to i32
    %c0_i32_25 = arith.constant 0 : i32
    %55 = arith.cmpi ne, %54, %c0_i32_25 : i32
    scf.if %55 {
      %c0_26 = arith.constant 0 : index
      %c0_27 = arith.constant 0 : index
      %56 = vector.load %arg5[%c0_26, %c0_27] : memref<16x1xf32, #tpu.memory_space<vmem>>, vector<16x1xf32>
      %c0_28 = arith.constant 0 : index
      %c0_29 = arith.constant 0 : index
      %57 = vector.load %arg6[%c0_28, %c0_29] : memref<16x1xf32, #tpu.memory_space<vmem>>, vector<16x1xf32>
      %58 = math.log %57 : vector<16x1xf32>
      %59 = arith.addf %56, %58 : vector<16x1xf32>
      %60 = vector.shape_cast %59 : vector<16x1xf32> to vector<1x16x1xf32>
      %cst_30 = arith.constant dense<0.000000e+00> : vector<1xf32>
      %61 = vector.multi_reduction <add>, %60, %cst_30 [1, 2] : vector<1x16x1xf32> to vector<1xf32>
      %62 = vector.shape_cast %61 : vector<1xf32> to vector<1x1x1xf32>
      %63 = vector.extract %62[0, 0, 0] : f32 from vector<1x1x1xf32>
      %c0_31 = arith.constant 0 : index
      %64 = memref.load %arg8[%c0_31] : memref<2xf32, #tpu.memory_space<smem>>
      %65 = arith.addf %63, %64 : f32
      %c1_32 = arith.constant 1 : index
      %66 = memref.load %arg8[%c1_32] : memref<2xf32, #tpu.memory_space<smem>>
      %cst_33 = arith.constant 2.000000e+00 : f32
      %67 = arith.mulf %cst_33, %66 : f32
      %68 = arith.subf %65, %67 : f32
      %cst_34 = arith.constant 3.125000e-02 : f32
      %69 = arith.mulf %cst_34, %68 : f32
      %c0_35 = arith.constant 0 : index
      %70 = memref.load %arg3[%c0_35] : memref<1xf32, #tpu.memory_space<smem>>
      memref.store %69, %arg3[%c0_35] : memref<1xf32, #tpu.memory_space<smem>>
    } else {
    }
    return
  }
  func.func @transform_1(%arg0: i32) -> (i32, i32) {
    %c0_i32 = arith.constant 0 : i32
    %c0_i32_0 = arith.constant 0 : i32
    return %arg0, %c0_i32 : i32, i32
  }
  func.func @transform_2(%arg0: i32) -> i32 {
    %c0_i32 = arith.constant 0 : i32
    %c0_i32_0 = arith.constant 0 : i32
    return %c0_i32 : i32
  }
}

</mosaic_0001>

<bundles_post_ra>
// kernel: tpu_custom_call.1
= control target key start
LH: loop header
LB: loop body
LE: loop exit
PB: predicated region body
PF: predicated region fallthrough
CT: control target
= control target key end

     0   :  { %7 = vsyncpa [#allocation9], 0  ;;  %s437_s0 = inlined_call_operand.hbm [shape: bf16[16,128], index: 0, kind: input, shape index: {}]   ;;  %s438_s1 = inlined_call_operand.hbm [shape: bf16[16,128], index: 1, kind: input, shape index: {}]   ;;  %s439_s2 = inlined_call_operand.hbm [shape: f32[1], index: 2, kind: output, shape index: {}]  }
   0x1   :  { %8 = vsyncpa [#allocation10], 0  ;;  %s13_s11 = sshll.u32 %s438_s1, 4  ;;  %s384_s12 = smov [#allocation8]   ;;  %s14_s11 = int_to_ptr.hbm [resolvable:$true] %s13_s11 }
   0x2   :  { %s15_s13 = sshll.u32 %s384_s12, 4  ;;  %s385_s14 = smov 64   ;;  %s16_s13 = int_to_ptr.vmem [resolvable:$true] %s15_s13 }
   0x3   :  { %s386_s15 = smov 4  }
   0x4   :  { %21 = dma.hbm_to_vmem [thread:$0]  %s14_s11, 128, %s16_s13, [#allocation9], %s385_s14, %s385_s14, %s386_s15  }
   0x5   :  { %378 = dma.done.wait [#allocation9], 128  }
   0x6   :  { %379 = vsyncadd [#allocation9], 4294967168  ;;  %s38_s18 = sshll.u32 %s437_s0, 4  ;;  %vm44_vm0 = vcmask 7168   ;;  %s387_s19 = smov [#allocation2]   ;;  %v388_v0 = vmov -inf   ;;  %s39_s18 = int_to_ptr.hbm [resolvable:$true] %s38_s18 }
   0x7   :  { %s40_s20 = sshll.u32 %s387_s19, 4  ;;  %45 = vst.msk [vmem:[#allocation3] sm:$0xff] %vm44_vm0, %v388_v0  ;;  %v389_v1 = vmov 0.0   ;;  %s41_s20 = int_to_ptr.vmem [resolvable:$true] %s40_s20 }
   0x8   :  { %46 = vst.msk [vmem:[#allocation3 + $0x8] sm:$0xff] %vm44_vm0, %v388_v0  ;;  %43 = dma.hbm_to_vmem [thread:$0]  %s39_s18, 128, %s41_s20, [#allocation7] }
   0x9   :  { %47 = vst.msk [vmem:[#allocation4] sm:$0xff] %vm44_vm0, %v389_v1 }
   0xa   :  { %48 = vst.msk [vmem:[#allocation4 + $0x8] sm:$0xff] %vm44_vm0, %v389_v1 }
   0xb   :  { %380 = dma.done.wait [#allocation7], 128 }
   0xc   :  { %381 = vsyncadd [#allocation7], 4294967168  ;;  %v275_v2 = vld [vmem:[#allocation8] sm:$0xff]  ;;  %v274_v3 = vld [vmem:[#allocation2] sm:$0xff]  ;;  %vm89_vm1 = vcmask 130048   ;;  %vm163_vm2 = vcmask 122880  }
   0xd   :  { %80 = vmatpush.bf16.xpose.msra.mxu0 %v275_v2  ;;  %v390_v34 = vmov 0   ;;  %v277_v60 = vld [vmem:[#allocation2] sm:$0xff]   ;;  %v281_v61 = vld [vmem:[#allocation8] sm:$0xff]   ;;  %s244_s26 = sshll.u32 %s439_s2, 4  ;;  %s391_s29 = smov [#allocation11]   ;;  %s245_s26 = int_to_ptr.hbm [resolvable:$true] %s244_s26 }
   0xe   :  { %298 = vset.pattern.permute.xlu1 %v390_v34  ;;  %299 = vset.pattern.permute.xlu0 %v390_v34  ;;  %v87_v35 = vld [vmem:[#allocation3] sm:$0xff]  ;;  %v278_v62 = vunpack.c.l.bf16 %v277_v60  ;;  %v279_v63 = vunpack.c.h.bf16 %v277_v60  ;;  %v282_v0 = vunpack.c.l.bf16 %v281_v61  ;;  %v283_v1 = vunpack.c.h.bf16 %v281_v61 }
   0xf   :  { %v88_v39 = vld [vmem:[#allocation3 + $0x8] sm:$0xff] }
  0x10   :  { %v191_v2 = vmul.f32 %v282_v0, %v278_v62 }
  0x14   :  { %81 = vmatmul.bf16.vlgmr.msra.gmra.mxu0 %v274_v3  ;;  %v192_v3 = vmul.f32 %v283_v1, %v279_v63 }
  0x91   :  { %v82_v4 = vpop.f32.mrf.mxu0 }
  0x92   :  { %v90_v5 = vsel %vm89_vm1, %v82_v4, -inf }
  0x93   :  { %91 = vmax.xlane.f32.xlu0 %v90_v5 }
  0x99   :  { %v418_v6 = vpop.f32.mrf.mxu0 }
  0x9a   :  { %v93_v7 = vsel %vm89_vm1, %v418_v6, -inf }
  0x9b   :  { %94 = vmax.xlane.f32.xlu0 %v93_v7  ;;  %v137_v8 = vmax.f32 %v90_v5, %v93_v7 }
  0x9d   :  { %v138_v9 = vrot.slane %v137_v8, 4 }
  0x9f   :  { %v139_v10 = vmax.f32 %v137_v8, %v138_v9  ;;  %v104_v8 = vld [vmem:[#allocation4] sm:$0xff] }
  0xa1   :  { %v140_v11 = vrot.slane %v139_v10, 2 }
  0xa3   :  { %v141_v12 = vmax.f32 %v139_v10, %v140_v11 }
  0xa5   :  { %v142_v13 = vrot.slane %v141_v12, 1 }
  0xa7   :  { %v143_v14 = vmax.f32 %v141_v12, %v142_v13  ;;  %v105_v13 = vld [vmem:[#allocation4 + $0x8] sm:$0xff] }
  0xa9   :  { %v144_v15 = vsub.f32 %v82_v4, %v143_v14  ;;  %v145_v16 = vsub.f32 %v418_v6, %v143_v14 }
  0xab   :  { %v146_v17 = vmul.f32 1.442695, %v144_v15  ;;  %v148_v18 = vmul.f32 1.442695, %v145_v16 }
  0xad   :  { %300 = vpow2.f32 %v146_v17 }
  0xae   :  { %302 = vpow2.f32 %v148_v18 }
  0xb3   :  { %v301_v19 = vpop.eup %300 }
  0xb4   :  { %v303_v20 = vpop.eup %302  ;;  %v150_v21 = vsel %vm89_vm1, %v301_v19, 0.0 }
  0xb5   :  { %v151_v22 = vsel %vm89_vm1, %v303_v20, 0.0 }
  0xb6   :  { %v152_v23 = vadd.f32 %v151_v22, %v150_v21 }
  0xb8   :  { %v153_v24 = vrot.slane %v152_v23, 4 }
  0xba   :  { %v154_v25 = vadd.f32 %v153_v24, %v152_v23 }
  0xbc   :  { %v155_v26 = vrot.slane %v154_v25, 2 }
  0xbe   :  { %v156_v27 = vadd.f32 %v155_v26, %v154_v25 }
  0xc0   :  { %v157_v28 = vrot.slane %v156_v27, 1 }
  0xc2   :  { %v158_v29 = vadd.f32 %v157_v28, %v156_v27 }
  0xc4   :  { %304 = vlog2.f32 %v158_v29 }
  0xca   :  { %v305_v30 = vpop.eup %304 }
  0xcb   :  { %v160_v31 = vmul.f32 0.6931472, %v305_v30 }
  0xcd   :  { %v161_v32 = vadd.f32 %v160_v31, %v143_v14 }
  0xcf   :  { %v164_v33 = vsel %vm163_vm2, %v161_v32, 0.0 }
  0xd0   :  { %165 = vadd.xlane.f32.xlu0 %v164_v33 }
 0x106   :  { %v92_v36 = vpop.xlane.xlu0 %91 }
 0x107   :  { %v96_v37 = vmax.f32 %v87_v35, %v92_v36 }
 0x109   :  { %v98_v38 = vsub.f32 %v87_v35, %v96_v37  ;;  %135 = vst.msk [vmem:[#allocation3] sm:$0xff] %vm44_vm0, %v96_v37  ;;  %110 = vperm.xlu1 %298, %v96_v37  }
 0x10b   :  { %v100_v5 = vmul.f32 1.442695, %v98_v38 }
 0x10e   :  { %v95_v40 = vpop.xlane.xlu0 %94 }
 0x10f   :  { %v97_v41 = vmax.f32 %v88_v39, %v95_v40 }
 0x110   :  { %v209_v22 = vld [vmem:[#allocation3] sm:$0xff] }
 0x111   :  { %v99_v42 = vsub.f32 %v88_v39, %v97_v41  ;;  %136 = vst.msk [vmem:[#allocation3 + $0x8] sm:$0xff] %vm44_vm0, %v97_v41  ;;  %115 = vperm.xlu1 %298, %v97_v41  }
 0x118   :  { %v210_v25 = vld [vmem:[#allocation3 + $0x8] sm:$0xff] }
 0x143   :  { %v166_v43 = vpop.xlane.xlu0 %165 }
 0x144   :  { %v167_v44 = vrot.slane %v166_v43, 4 }
 0x146   :  { %v168_v45 = vadd.f32 %v167_v44, %v166_v43 }
 0x148   :  { %v169_v46 = vrot.slane %v168_v45, 2 }
 0x14a   :  { %v170_v47 = vadd.f32 %v169_v46, %v168_v45 }
 0x14c   :  { %v171_v48 = vrot.slane %v170_v47, 1 }
 0x14e   :  { %v172_v49 = vadd.f32 %v171_v48, %v170_v47 }
 0x150   :  { %284 = vpush %v172_v49 }
 0x17b   :  { %v111_v50 = vpop.permute.xlu1 %110 }
 0x17c   :  { %v118_v51 = vsub.f32 %v82_v4, %v111_v50  ;;  %v193_v4 = vadd.f32 %v192_v3, %v191_v2 }
 0x17e   :  { %v120_v52 = vmul.f32 1.442695, %v118_v51  ;;  %194 = vadd.xlane.f32.xlu1 %v193_v4 }
 0x180   :  { %306 = vpow2.f32 %v120_v52 }
 0x181   :  { %s285_s0 = spop %284 }
 0x183   :  { %v116_v53 = vpop.permute.xlu1 %115 }
 0x184   :  { %v119_v54 = vsub.f32 %v418_v6, %v116_v53  ;;  %v102_v6 = vmul.f32 1.442695, %v99_v42 }
 0x186   :  { %v307_v55 = vpop.eup %306  ;;  %v122_v56 = vmul.f32 1.442695, %v119_v54 }
 0x187   :  { %v124_v57 = vsel %vm89_vm1, %v307_v55, 0.0 }
 0x188   :  { %308 = vpow2.f32 %v122_v56  ;;  %125 = vadd.xlane.f32.xlu2 %v124_v57 }
 0x189   :  { %310 = vpow2.f32 %v100_v5 }
 0x18a   :  { %312 = vpow2.f32 %v102_v6 }
 0x18e   :  { %v309_v58 = vpop.eup %308 }
 0x18f   :  { %v127_v59 = vsel %vm89_vm1, %v309_v58, 0.0  ;;  %v311_v7 = vpop.eup %310 }
 0x190   :  { %128 = vadd.xlane.f32.xlu2 %v127_v59  ;;  %v106_v9 = vmul.f32 %v311_v7, %v104_v8  ;;  %v313_v12 = vpop.eup %312 }
 0x191   :  { %v107_v14 = vmul.f32 %v313_v12, %v105_v13 }
 0x1f1   :  { %v195_v30 = vpop.xlane.xlu1 %194 }
 0x1f2   :  { %v196_v31 = vrot.slane %v195_v30, 4 }
 0x1f4   :  { %v197_v32 = vadd.f32 %v196_v31, %v195_v30 }
 0x1f6   :  { %v198_v33 = vrot.slane %v197_v32, 2 }
 0x1f8   :  { %v199_v34 = vadd.f32 %v198_v33, %v197_v32 }
 0x1fa   :  { %v200_v35 = vrot.slane %v199_v34, 1 }
 0x1fb   :  { %v126_v10 = vpop.xlane.xlu2 %125 }
 0x1fc   :  { %v130_v11 = vadd.f32 %v126_v10, %v106_v9  ;;  %v201_v36 = vadd.f32 %v200_v35, %v199_v34 }
 0x1fe   :  { %133 = vst.msk [vmem:[#allocation4] sm:$0xff] %vm44_vm0, %v130_v11 }
 0x1ff   :  { %286 = vpush %v201_v36 }
 0x203   :  { %v129_v15 = vpop.xlane.xlu2 %128 }
 0x204   :  { %v131_v16 = vadd.f32 %v129_v15, %v107_v14 }
 0x205   :  { %v211_v17 = vld [vmem:[#allocation4] sm:$0xff] }
 0x206   :  { %134 = vst.msk [vmem:[#allocation4 + $0x8] sm:$0xff] %vm44_vm0, %v131_v16  ;;  %314 = vlog2.f32 %v211_v17 }
 0x20c   :  { %v315_v19 = vpop.eup %314 }
 0x20d   :  { %v212_v18 = vld [vmem:[#allocation4 + $0x8] sm:$0xff]  ;;  %v214_v20 = vmul.f32 0.6931472, %v315_v19 }
 0x20e   :  { %316 = vlog2.f32 %v212_v18 }
 0x20f   :  { %v217_v24 = vadd.f32 %v214_v20, %v209_v22 }
 0x211   :  { %v219_v27 = vsel %vm44_vm0, %v217_v24, 0.0 }
 0x214   :  { %v317_v21 = vpop.eup %316 }
 0x215   :  { %v216_v23 = vmul.f32 0.6931472, %v317_v21 }
 0x217   :  { %v218_v26 = vadd.f32 %v216_v23, %v210_v25 }
 0x219   :  { %v220_v28 = vsel %vm44_vm0, %v218_v26, 0.0 }
 0x21a   :  { %v221_v29 = vadd.f32 %v220_v28, %v219_v27 }
 0x21c   :  { %222 = vadd.xlane.f32.xlu2 %v221_v29 }
 0x230   :  { %s287_s1 = spop %286 }
 0x231   :  { %s234_s22 = smul.f32 2.0, %s287_s1 }
 0x28f   :  { %v223_v37 = vpop.xlane.xlu2 %222 }
 0x290   :  { %v224_v38 = vrot.slane %v223_v37, 4 }
 0x292   :  { %v225_v39 = vadd.f32 %v224_v38, %v223_v37 }
 0x294   :  { %v226_v40 = vrot.slane %v225_v39, 2 }
 0x296   :  { %v227_v41 = vadd.f32 %v226_v40, %v225_v39 }
 0x298   :  { %v228_v42 = vrot.slane %v227_v41, 1 }
 0x29a   :  { %v229_v43 = vadd.f32 %v228_v42, %v227_v41 }
 0x29c   :  { %288 = vpush %v229_v43 }
 0x2cd   :  { %s289_s21 = spop %288 }
 0x2ce   :  { %s232_s23 = sadd.f32 %s289_s21, %s285_s0 }
 0x2d0   :  { %s235_s27 = ssub.f32 %s232_s23, %s234_s22 }
 0x2d2   :  { %s236_s28 = smul.f32 0.03125, %s235_s27 }
 0x2d4   :  { %238 = sst [smem:[#allocation11]] %s236_s28 }
 0x2d5   :  { %247 = dma.smem_to_hbm %s391_s29, 16, %s245_s26, [#allocation10]  }
 0x2d6   :  { %382 = dma.done.wait [#allocation10], 16  }
 0x2d7   :  { %383 = vsyncadd [#allocation10], 4294967280 }
 0x2d8   :  { %252 = sfence }
 0x2d9   :  { %253 = vsyncpa [#allocation9], 1 }
 0x2da   :  { %254 = vsyncpa [#allocation10], 1 }
 0x2db   :  { %255 = vsyncmov [#allocation7] }
 0x2de   :  { %s256_s30 = vpop.sfrf %255 }
 0x2df   :  { %p273_p0 = scmp.ne.s32.totalorder %s256_s30, 0 }
 0x2e1   :  { %260 = shalt.err (%p273_p0)  }

</bundles_post_ra>
